<compile_context>
chip_gen: v5e
topology: v5e:2x2
jax: 0.10.0
libtpu: 0.0.40
codegen_flags: <defaults>
</compile_context>

<pallas_src>
import functools

import jax
import jax.numpy as jnp
import numpy as np
from jax.experimental import pallas as pl
from jax.experimental.pallas import tpu as pltpu

EPS = 1e-5


def _res_block_kernel(xs_ref, rhs1_ref, rhs2_ref, spread_ref, fold_ref, bnl_ref,
                      out_ref, o1p_ref, *, inv_cnt):
    """All 2-D working values are (N*H, W*Cout) lane-dense slabs.

    xs_ref    : (N, H+2, W*Cin)  row-padded input slab (zero top/bottom rows)
    rhs1_ref  : (3, W*Cin,  W*Cout)  width-Toeplitz-packed conv1 weights (one per kernel row)
    rhs2_ref  : (3, W*Cout, W*Cout)  width-Toeplitz-packed conv2 weights
    spread_ref: (W*Cin, W*Cout)      places x's Cin channels into each pixel's Cout slot
    fold_ref  : (W*Cout, W*Cout)     per-channel fold+broadcast (1 where lane%Cout matches)
    bnl_ref   : (4, W*Cout)          [g1, be1, g2, be2] pre-tiled to the lane layout
    out_ref   : (N*H, W*Cout)        lane-dense output slab
    o1p_ref   : (N, H+2, W*Cout)     row-padded out1 scratch (VMEM)
    """
    N, Hp, LCI = xs_ref.shape
    H = Hp - 2
    NH = N * H
    LCO = out_ref.shape[-1]

    fold = fold_ref[...]                                   # (LCO, LCO)

    # ---------------- conv1: 3 accumulating row-strip matmuls (no im2col scratch) ----------
    y1 = jnp.dot(xs_ref[:, 0:H, :].reshape(NH, LCI), rhs1_ref[0],
                 preferred_element_type=jnp.float32)
    for r in (1, 2):
        y1 = y1 + jnp.dot(xs_ref[:, r:r + H, :].reshape(NH, LCI), rhs1_ref[r],
                          preferred_element_type=jnp.float32)

    # ---------------- bn1 (training-mode batch stats, centered var) + ReLU ------------------
    m1 = jnp.sum(jnp.dot(y1, fold, preferred_element_type=jnp.float32),
                 axis=0, keepdims=True) * inv_cnt          # per-channel mean, per-lane
    d1 = y1 - m1
    v1 = jnp.sum(jnp.dot(d1 * d1, fold, preferred_element_type=jnp.float32),
                 axis=0, keepdims=True) * inv_cnt          # per-channel biased variance
    out1 = jnp.maximum(d1 * (bnl_ref[0:1, :] * jax.lax.rsqrt(v1 + EPS))
                       + bnl_ref[1:2, :], 0.0)

    # ---------------- partial residual: out1[..., :Cin] += x, fused (no rewrite) ------------
    out1 = out1 + jnp.dot(xs_ref[:, 1:H + 1, :].reshape(NH, LCI), spread_ref[...],
                          preferred_element_type=jnp.float32)

    # ---------------- row-padded out1 scratch: 2 zero-row stores + ONE dense interior store -
    zrow = jnp.zeros((N, 1, LCO), jnp.float32)
    o1p_ref[:, 0:1, :] = zrow
    o1p_ref[:, Hp - 1:Hp, :] = zrow
    o1p_ref[:, 1:H + 1, :] = out1.reshape(N, H, LCO)

    # ---------------- conv2: 3 accumulating row-strip matmuls --------------------------------
    y2 = jnp.dot(o1p_ref[:, 0:H, :].reshape(NH, LCO), rhs2_ref[0],
                 preferred_element_type=jnp.float32)
    for r in (1, 2):
        y2 = y2 + jnp.dot(o1p_ref[:, r:r + H, :].reshape(NH, LCO), rhs2_ref[r],
                          preferred_element_type=jnp.float32)

    # ---------------- bn2 + ReLU -------------------------------------------------------------
    m2 = jnp.sum(jnp.dot(y2, fold, preferred_element_type=jnp.float32),
                 axis=0, keepdims=True) * inv_cnt
    d2 = y2 - m2
    v2 = jnp.sum(jnp.dot(d2 * d2, fold, preferred_element_type=jnp.float32),
                 axis=0, keepdims=True) * inv_cnt
    out2 = jnp.maximum(d2 * (bnl_ref[2:3, :] * jax.lax.rsqrt(v2 + EPS))
                       + bnl_ref[3:4, :], 0.0)

    # ---------------- final residual, single lane-dense (128-wide) store --------------------
    out_ref[...] = out2 + out1


def res_block_forward(x_nchw, params):
    """x_nchw: (N, Cin, H, W) float32 -> (N, Cout, H, W) float32."""
    w1, b1, g1, be1, w2, b2, g2, be2 = params               # b1/b2 unused: cancel under BN
    N, Cin, H, W = x_nchw.shape
    Cout = w1.shape[-1]
    assert Cin <= Cout, "partial residual requires inc <= outc"
    Hp = H + 2
    LCI, LCO = W * Cin, W * Cout

    # NCHW -> row-padded (N, H+2, W*Cin) slab; channels packed into lanes (w-major, c-minor).
    x = jnp.transpose(x_nchw, (0, 2, 3, 1)).astype(jnp.float32)          # (N, H, W, Cin)
    xs = jnp.pad(x.reshape(N, H, LCI), ((0, 0), (1, 1), (0, 0)))         # zero top/bottom rows

    # Width-Toeplitz weight packing: one (W*C, W*Cout) matrix per kernel row r so that each
    # conv = sum_r (row-strip @ rhs[r]); column taps + zero column-padding live in the weights.
    T = np.zeros((3, W, W), np.float32)                     # T[s, u, v] = 1 iff u == v + s - 1
    for s in range(3):
        for v in range(W):
            u = v + s - 1
            if 0 <= u < W:
                T[s, u, v] = 1.0
    Tj = jnp.asarray(T)
    hi = jax.lax.Precision.HIGHEST                          # exact f32 weight placement
    rhs1 = jnp.einsum('rsio,suv->ruivo', w1.astype(jnp.float32), Tj,
                      precision=hi).reshape(3, LCI, LCO)
    rhs2 = jnp.einsum('rsio,suv->ruivo', w2.astype(jnp.float32), Tj,
                      precision=hi).reshape(3, LCO, LCO)
    # conv biases omitted: a per-channel constant cancels under training-mode BN mean subtraction.

    # Residual channel-spread matrix: x's Cin channels -> first Cin lanes of each pixel slot.
    spread = np.zeros((LCI, LCO), np.float32)
    for w in range(W):
        for c in range(Cin):
            spread[w * Cin + c, w * Cout + c] = 1.0

    # Per-channel fold+broadcast matrix for BN statistics: (y @ fold) sums every channel over
    # its W lane-groups and re-broadcasts the total to every lane of that channel.
    lane_ch = np.arange(LCO) % Cout
    fold = (lane_ch[:, None] == lane_ch[None, :]).astype(np.float32)

    # BN affine params pre-tiled to the W*Cout lane layout.
    bnl = jnp.stack([jnp.tile(g1, W), jnp.tile(be1, W),
                     jnp.tile(g2, W), jnp.tile(be2, W)]).astype(jnp.float32)

    vmem = pl.BlockSpec(memory_space=pltpu.MemorySpace.VMEM)
    kernel = functools.partial(_res_block_kernel, inv_cnt=1.0 / float(N * H * W))
    out_slab = pl.pallas_call(
        kernel,
        out_shape=jax.ShapeDtypeStruct((N * H, LCO), jnp.float32),       # lane-dense slab
        in_specs=[vmem] * 6,
        out_specs=vmem,
        scratch_shapes=[pltpu.VMEM((N, Hp, LCO), jnp.float32)],          # row-padded out1
    )(xs, rhs1, rhs2, jnp.asarray(spread), jnp.asarray(fold), bnl)

    out = out_slab.reshape(N, H, W, Cout)                   # layout plumbing in the wrapper
    return jnp.transpose(out, (0, 3, 1, 2))                 # back to NCHW


def res_block_reference(x_nchw, params):
    """Pure-JAX reference (XLA conv, biases included, training-mode BN)."""
    w1, b1, g1, be1, w2, b2, g2, be2 = params
    Cin = x_nchw.shape[1]
    x = jnp.transpose(x_nchw, (0, 2, 3, 1)).astype(jnp.float32)

    def conv(a, w, b):
        y = jax.lax.conv_general_dilated(
            a, w, window_strides=(1, 1), padding="SAME",
            dimension_numbers=("NHWC", "HWIO", "NHWC"))
        return y + b.reshape(1, 1, 1, -1)

    def bn(y, g, be):
        m = jnp.mean(y, axis=(0, 1, 2), keepdims=True)
        v = jnp.mean((y - m) ** 2, axis=(0, 1, 2), keepdims=True)
        return (y - m) * jax.lax.rsqrt(v + EPS) * g.reshape(1, 1, 1, -1) + be.reshape(1, 1, 1, -1)

    out1 = jnp.maximum(bn(conv(x, w1, b1), g1, be1), 0.0)
    out1 = out1.at[..., :Cin].add(x)
    out = jnp.maximum(bn(conv(out1, w2, b2), g2, be2), 0.0)
    out = out + out1
    return jnp.transpose(out, (0, 3, 1, 2))


def init_params(key, inc, outc):
    ks = jax.random.split(key, 8)
    w1 = 0.2 * jax.random.normal(ks[0], (3, 3, inc, outc), jnp.float32)
    b1 = 0.1 * jax.random.normal(ks[1], (outc,), jnp.float32)
    g1 = 1.0 + 0.1 * jax.random.normal(ks[2], (outc,), jnp.float32)
    be1 = 0.1 * jax.random.normal(ks[3], (outc,), jnp.float32)
    w2 = 0.2 * jax.random.normal(ks[4], (3, 3, outc, outc), jnp.float32)
    b2 = 0.1 * jax.random.normal(ks[5], (outc,), jnp.float32)
    g2 = 1.0 + 0.1 * jax.random.normal(ks[6], (outc,), jnp.float32)
    be2 = 0.1 * jax.random.normal(ks[7], (outc,), jnp.float32)
    return (w1, b1, g1, be1, w2, b2, g2, be2)


if __name__ == "__main__":
    key = jax.random.PRNGKey(0)
    kx, kp = jax.random.split(key)

    N, inc, outc, H, W = 2, 4, 8, 16, 16
    x = jax.random.normal(kx, (N, inc, H, W), jnp.float32)   # PyTorch-style NCHW input
    params = init_params(kp, inc, outc)

    out = res_block_forward(x, params)
    out = jax.block_until_ready(out)

    ref = jax.block_until_ready(res_block_reference(x, params))
    assert out.shape == (N, outc, H, W), out.shape
    np.testing.assert_allclose(np.asarray(out), np.asarray(ref), rtol=1e-3, atol=1e-3)

    print("KERNEL_OK")
</pallas_src>

<mosaic_0001>
module attributes {stable_mosaic.version = 11 : i64} {
  func.func @_res_block_kernel(%arg0: memref<2x18x64xf32, #tpu.memory_space<vmem>>, %arg1: memref<3x64x128xf32, #tpu.memory_space<vmem>>, %arg2: memref<3x128x128xf32, #tpu.memory_space<vmem>>, %arg3: memref<64x128xf32, #tpu.memory_space<vmem>>, %arg4: memref<128x128xf32, #tpu.memory_space<vmem>>, %arg5: memref<4x128xf32, #tpu.memory_space<vmem>>, %arg6: memref<32x128xf32, #tpu.memory_space<vmem>>, %arg7: memref<2x18x128xf32, #tpu.memory_space<vmem>>) attributes {dimension_semantics = [], scalar_prefetch = 0 : i64, scratch_operands = 1 : i64, tpu.core_type = #tpu.core_type<tc>} {
    %c0 = arith.constant 0 : index
    %c0_0 = arith.constant 0 : index
    %0 = vector.load %arg4[%c0, %c0_0] : memref<128x128xf32, #tpu.memory_space<vmem>>, vector<128x128xf32>
    %c0_1 = arith.constant 0 : index
    %c0_2 = arith.constant 0 : index
    %c0_3 = arith.constant 0 : index
    %1 = vector.load %arg0[%c0_1, %c0_2, %c0_3] : memref<2x18x64xf32, #tpu.memory_space<vmem>>, vector<2x16x64xf32>
    %2 = vector.shape_cast %1 : vector<2x16x64xf32> to vector<32x64xf32>
    %c0_4 = arith.constant 0 : index
    %c0_5 = arith.constant 0 : index
    %c0_6 = arith.constant 0 : index
    %3 = vector.load %arg1[%c0_4, %c0_5, %c0_6] : memref<3x64x128xf32, #tpu.memory_space<vmem>>, vector<1x64x128xf32>
    %4 = vector.shape_cast %3 : vector<1x64x128xf32> to vector<64x128xf32>
    %cst = arith.constant dense<0.000000e+00> : vector<32x128xf32>
    %5 = tpu.matmul %2, %4, %cst {dimension_numbers = #tpu.dot_dimension_numbers<[1], [0], [0], [1], [0, 0, 1, 1], [], []>} : vector<32x64xf32>, vector<64x128xf32>, vector<32x128xf32> -> vector<32x128xf32>
    %c0_7 = arith.constant 0 : index
    %c1 = arith.constant 1 : index
    %c0_8 = arith.constant 0 : index
    %6 = vector.load %arg0[%c0_7, %c1, %c0_8] : memref<2x18x64xf32, #tpu.memory_space<vmem>>, vector<2x16x64xf32>
    %7 = vector.shape_cast %6 : vector<2x16x64xf32> to vector<32x64xf32>
    %c1_9 = arith.constant 1 : index
    %c0_10 = arith.constant 0 : index
    %c0_11 = arith.constant 0 : index
    %8 = vector.load %arg1[%c1_9, %c0_10, %c0_11] : memref<3x64x128xf32, #tpu.memory_space<vmem>>, vector<1x64x128xf32>
    %9 = vector.shape_cast %8 : vector<1x64x128xf32> to vector<64x128xf32>
    %cst_12 = arith.constant dense<0.000000e+00> : vector<32x128xf32>
    %10 = tpu.matmul %7, %9, %cst_12 {dimension_numbers = #tpu.dot_dimension_numbers<[1], [0], [0], [1], [0, 0, 1, 1], [], []>} : vector<32x64xf32>, vector<64x128xf32>, vector<32x128xf32> -> vector<32x128xf32>
    %11 = arith.addf %5, %10 : vector<32x128xf32>
    %c0_13 = arith.constant 0 : index
    %c2 = arith.constant 2 : index
    %c0_14 = arith.constant 0 : index
    %12 = vector.load %arg0[%c0_13, %c2, %c0_14] : memref<2x18x64xf32, #tpu.memory_space<vmem>>, vector<2x16x64xf32>
    %13 = vector.shape_cast %12 : vector<2x16x64xf32> to vector<32x64xf32>
    %c2_15 = arith.constant 2 : index
    %c0_16 = arith.constant 0 : index
    %c0_17 = arith.constant 0 : index
    %14 = vector.load %arg1[%c2_15, %c0_16, %c0_17] : memref<3x64x128xf32, #tpu.memory_space<vmem>>, vector<1x64x128xf32>
    %15 = vector.shape_cast %14 : vector<1x64x128xf32> to vector<64x128xf32>
    %cst_18 = arith.constant dense<0.000000e+00> : vector<32x128xf32>
    %16 = tpu.matmul %13, %15, %cst_18 {dimension_numbers = #tpu.dot_dimension_numbers<[1], [0], [0], [1], [0, 0, 1, 1], [], []>} : vector<32x64xf32>, vector<64x128xf32>, vector<32x128xf32> -> vector<32x128xf32>
    %17 = arith.addf %11, %16 : vector<32x128xf32>
    %cst_19 = arith.constant dense<0.000000e+00> : vector<32x128xf32>
    %18 = tpu.matmul %17, %0, %cst_19 {dimension_numbers = #tpu.dot_dimension_numbers<[1], [0], [0], [1], [0, 0, 1, 1], [], []>} : vector<32x128xf32>, vector<128x128xf32>, vector<32x128xf32> -> vector<32x128xf32>
    %cst_20 = arith.constant dense<0.000000e+00> : vector<128xf32>
    %19 = vector.multi_reduction <add>, %18, %cst_20 [0] : vector<32x128xf32> to vector<128xf32>
    %20 = vector.shape_cast %19 : vector<128xf32> to vector<1x128xf32>
    %cst_21 = arith.constant 0.001953125 : f32
    %21 = vector.broadcast %cst_21 : f32 to vector<1x128xf32>
    %22 = arith.mulf %20, %21 : vector<1x128xf32>
    %23 = vector.broadcast %22 : vector<1x128xf32> to vector<32x128xf32>
    %24 = arith.subf %17, %23 : vector<32x128xf32>
    %25 = arith.mulf %24, %24 : vector<32x128xf32>
    %cst_22 = arith.constant dense<0.000000e+00> : vector<32x128xf32>
    %26 = tpu.matmul %25, %0, %cst_22 {dimension_numbers = #tpu.dot_dimension_numbers<[1], [0], [0], [1], [0, 0, 1, 1], [], []>} : vector<32x128xf32>, vector<128x128xf32>, vector<32x128xf32> -> vector<32x128xf32>
    %cst_23 = arith.constant dense<0.000000e+00> : vector<128xf32>
    %27 = vector.multi_reduction <add>, %26, %cst_23 [0] : vector<32x128xf32> to vector<128xf32>
    %28 = vector.shape_cast %27 : vector<128xf32> to vector<1x128xf32>
    %cst_24 = arith.constant 0.001953125 : f32
    %29 = vector.broadcast %cst_24 : f32 to vector<1x128xf32>
    %30 = arith.mulf %28, %29 : vector<1x128xf32>
    %c0_25 = arith.constant 0 : index
    %c0_26 = arith.constant 0 : index
    %31 = vector.load %arg5[%c0_25, %c0_26] : memref<4x128xf32, #tpu.memory_space<vmem>>, vector<1x128xf32>
    %cst_27 = arith.constant 9.99999974E-6 : f32
    %32 = vector.broadcast %cst_27 : f32 to vector<1x128xf32>
    %33 = arith.addf %30, %32 : vector<1x128xf32>
    %34 = math.rsqrt %33 : vector<1x128xf32>
    %35 = arith.mulf %31, %34 : vector<1x128xf32>
    %36 = vector.broadcast %35 : vector<1x128xf32> to vector<32x128xf32>
    %37 = arith.mulf %24, %36 : vector<32x128xf32>
    %c1_28 = arith.constant 1 : index
    %c0_29 = arith.constant 0 : index
    %38 = vector.load %arg5[%c1_28, %c0_29] : memref<4x128xf32, #tpu.memory_space<vmem>>, vector<1x128xf32>
    %39 = vector.broadcast %38 : vector<1x128xf32> to vector<32x128xf32>
    %40 = arith.addf %37, %39 : vector<32x128xf32>
    %cst_30 = arith.constant 0.000000e+00 : f32
    %41 = vector.broadcast %cst_30 : f32 to vector<32x128xf32>
    %42 = arith.maximumf %40, %41 : vector<32x128xf32>
    %c0_31 = arith.constant 0 : index
    %c1_32 = arith.constant 1 : index
    %c0_33 = arith.constant 0 : index
    %43 = vector.load %arg0[%c0_31, %c1_32, %c0_33] : memref<2x18x64xf32, #tpu.memory_space<vmem>>, vector<2x16x64xf32>
    %44 = vector.shape_cast %43 : vector<2x16x64xf32> to vector<32x64xf32>
    %c0_34 = arith.constant 0 : index
    %c0_35 = arith.constant 0 : index
    %45 = vector.load %arg3[%c0_34, %c0_35] : memref<64x128xf32, #tpu.memory_space<vmem>>, vector<64x128xf32>
    %cst_36 = arith.constant dense<0.000000e+00> : vector<32x128xf32>
    %46 = tpu.matmul %44, %45, %cst_36 {dimension_numbers = #tpu.dot_dimension_numbers<[1], [0], [0], [1], [0, 0, 1, 1], [], []>} : vector<32x64xf32>, vector<64x128xf32>, vector<32x128xf32> -> vector<32x128xf32>
    %47 = arith.addf %42, %46 : vector<32x128xf32>
    %cst_37 = arith.constant 0.000000e+00 : f32
    %48 = vector.broadcast %cst_37 : f32 to vector<2x1x128xf32>
    %c0_38 = arith.constant 0 : index
    %c0_39 = arith.constant 0 : index
    %c0_40 = arith.constant 0 : index
    %49 = vector.load %arg7[%c0_38, %c0_39, %c0_40] : memref<2x18x128xf32, #tpu.memory_space<vmem>>, vector<2x1x128xf32>
    tpu.vector_store %arg7[%c0_38, %c0_39, %c0_40], %48 {strides = array<i32>} : memref<2x18x128xf32, #tpu.memory_space<vmem>>, vector<2x1x128xf32>,
    %c0_41 = arith.constant 0 : index
    %c17 = arith.constant 17 : index
    %c0_42 = arith.constant 0 : index
    %50 = vector.load %arg7[%c0_41, %c17, %c0_42] : memref<2x18x128xf32, #tpu.memory_space<vmem>>, vector<2x1x128xf32>
    tpu.vector_store %arg7[%c0_41, %c17, %c0_42], %48 {strides = array<i32>} : memref<2x18x128xf32, #tpu.memory_space<vmem>>, vector<2x1x128xf32>,
    %51 = vector.shape_cast %47 : vector<32x128xf32> to vector<2x16x128xf32>
    %c0_43 = arith.constant 0 : index
    %c1_44 = arith.constant 1 : index
    %c0_45 = arith.constant 0 : index
    %52 = vector.load %arg7[%c0_43, %c1_44, %c0_45] : memref<2x18x128xf32, #tpu.memory_space<vmem>>, vector<2x16x128xf32>
    tpu.vector_store %arg7[%c0_43, %c1_44, %c0_45], %51 {strides = array<i32>} : memref<2x18x128xf32, #tpu.memory_space<vmem>>, vector<2x16x128xf32>,
    %c0_46 = arith.constant 0 : index
    %c0_47 = arith.constant 0 : index
    %c0_48 = arith.constant 0 : index
    %53 = vector.load %arg7[%c0_46, %c0_47, %c0_48] : memref<2x18x128xf32, #tpu.memory_space<vmem>>, vector<2x16x128xf32>
    %54 = vector.shape_cast %53 : vector<2x16x128xf32> to vector<32x128xf32>
    %c0_49 = arith.constant 0 : index
    %c0_50 = arith.constant 0 : index
    %c0_51 = arith.constant 0 : index
    %55 = vector.load %arg2[%c0_49, %c0_50, %c0_51] : memref<3x128x128xf32, #tpu.memory_space<vmem>>, vector<1x128x128xf32>
    %56 = vector.shape_cast %55 : vector<1x128x128xf32> to vector<128x128xf32>
    %cst_52 = arith.constant dense<0.000000e+00> : vector<32x128xf32>
    %57 = tpu.matmul %54, %56, %cst_52 {dimension_numbers = #tpu.dot_dimension_numbers<[1], [0], [0], [1], [0, 0, 1, 1], [], []>} : vector<32x128xf32>, vector<128x128xf32>, vector<32x128xf32> -> vector<32x128xf32>
    %c0_53 = arith.constant 0 : index
    %c1_54 = arith.constant 1 : index
    %c0_55 = arith.constant 0 : index
    %58 = vector.load %arg7[%c0_53, %c1_54, %c0_55] : memref<2x18x128xf32, #tpu.memory_space<vmem>>, vector<2x16x128xf32>
    %59 = vector.shape_cast %58 : vector<2x16x128xf32> to vector<32x128xf32>
    %c1_56 = arith.constant 1 : index
    %c0_57 = arith.constant 0 : index
    %c0_58 = arith.constant 0 : index
    %60 = vector.load %arg2[%c1_56, %c0_57, %c0_58] : memref<3x128x128xf32, #tpu.memory_space<vmem>>, vector<1x128x128xf32>
    %61 = vector.shape_cast %60 : vector<1x128x128xf32> to vector<128x128xf32>
    %cst_59 = arith.constant dense<0.000000e+00> : vector<32x128xf32>
    %62 = tpu.matmul %59, %61, %cst_59 {dimension_numbers = #tpu.dot_dimension_numbers<[1], [0], [0], [1], [0, 0, 1, 1], [], []>} : vector<32x128xf32>, vector<128x128xf32>, vector<32x128xf32> -> vector<32x128xf32>
    %63 = arith.addf %57, %62 : vector<32x128xf32>
    %c0_60 = arith.constant 0 : index
    %c2_61 = arith.constant 2 : index
    %c0_62 = arith.constant 0 : index
    %64 = vector.load %arg7[%c0_60, %c2_61, %c0_62] : memref<2x18x128xf32, #tpu.memory_space<vmem>>, vector<2x16x128xf32>
    %65 = vector.shape_cast %64 : vector<2x16x128xf32> to vector<32x128xf32>
    %c2_63 = arith.constant 2 : index
    %c0_64 = arith.constant 0 : index
    %c0_65 = arith.constant 0 : index
    %66 = vector.load %arg2[%c2_63, %c0_64, %c0_65] : memref<3x128x128xf32, #tpu.memory_space<vmem>>, vector<1x128x128xf32>
    %67 = vector.shape_cast %66 : vector<1x128x128xf32> to vector<128x128xf32>
    %cst_66 = arith.constant dense<0.000000e+00> : vector<32x128xf32>
    %68 = tpu.matmul %65, %67, %cst_66 {dimension_numbers = #tpu.dot_dimension_numbers<[1], [0], [0], [1], [0, 0, 1, 1], [], []>} : vector<32x128xf32>, vector<128x128xf32>, vector<32x128xf32> -> vector<32x128xf32>
    %69 = arith.addf %63, %68 : vector<32x128xf32>
    %cst_67 = arith.constant dense<0.000000e+00> : vector<32x128xf32>
    %70 = tpu.matmul %69, %0, %cst_67 {dimension_numbers = #tpu.dot_dimension_numbers<[1], [0], [0], [1], [0, 0, 1, 1], [], []>} : vector<32x128xf32>, vector<128x128xf32>, vector<32x128xf32> -> vector<32x128xf32>
    %cst_68 = arith.constant dense<0.000000e+00> : vector<128xf32>
    %71 = vector.multi_reduction <add>, %70, %cst_68 [0] : vector<32x128xf32> to vector<128xf32>
    %72 = vector.shape_cast %71 : vector<128xf32> to vector<1x128xf32>
    %cst_69 = arith.constant 0.001953125 : f32
    %73 = vector.broadcast %cst_69 : f32 to vector<1x128xf32>
    %74 = arith.mulf %72, %73 : vector<1x128xf32>
    %75 = vector.broadcast %74 : vector<1x128xf32> to vector<32x128xf32>
    %76 = arith.subf %69, %75 : vector<32x128xf32>
    %77 = arith.mulf %76, %76 : vector<32x128xf32>
    %cst_70 = arith.constant dense<0.000000e+00> : vector<32x128xf32>
    %78 = tpu.matmul %77, %0, %cst_70 {dimension_numbers = #tpu.dot_dimension_numbers<[1], [0], [0], [1], [0, 0, 1, 1], [], []>} : vector<32x128xf32>, vector<128x128xf32>, vector<32x128xf32> -> vector<32x128xf32>
    %cst_71 = arith.constant dense<0.000000e+00> : vector<128xf32>
    %79 = vector.multi_reduction <add>, %78, %cst_71 [0] : vector<32x128xf32> to vector<128xf32>
    %80 = vector.shape_cast %79 : vector<128xf32> to vector<1x128xf32>
    %cst_72 = arith.constant 0.001953125 : f32
    %81 = vector.broadcast %cst_72 : f32 to vector<1x128xf32>
    %82 = arith.mulf %80, %81 : vector<1x128xf32>
    %c2_73 = arith.constant 2 : index
    %c0_74 = arith.constant 0 : index
    %83 = vector.load %arg5[%c2_73, %c0_74] : memref<4x128xf32, #tpu.memory_space<vmem>>, vector<1x128xf32>
    %cst_75 = arith.constant 9.99999974E-6 : f32
    %84 = vector.broadcast %cst_75 : f32 to vector<1x128xf32>
    %85 = arith.addf %82, %84 : vector<1x128xf32>
    %86 = math.rsqrt %85 : vector<1x128xf32>
    %87 = arith.mulf %83, %86 : vector<1x128xf32>
    %88 = vector.broadcast %87 : vector<1x128xf32> to vector<32x128xf32>
    %89 = arith.mulf %76, %88 : vector<32x128xf32>
    %c3 = arith.constant 3 : index
    %c0_76 = arith.constant 0 : index
    %90 = vector.load %arg5[%c3, %c0_76] : memref<4x128xf32, #tpu.memory_space<vmem>>, vector<1x128xf32>
    %91 = vector.broadcast %90 : vector<1x128xf32> to vector<32x128xf32>
    %92 = arith.addf %89, %91 : vector<32x128xf32>
    %cst_77 = arith.constant 0.000000e+00 : f32
    %93 = vector.broadcast %cst_77 : f32 to vector<32x128xf32>
    %94 = arith.maximumf %92, %93 : vector<32x128xf32>
    %95 = arith.addf %94, %47 : vector<32x128xf32>
    %c0_78 = arith.constant 0 : index
    %c0_79 = arith.constant 0 : index
    %96 = vector.load %arg6[%c0_78, %c0_79] : memref<32x128xf32, #tpu.memory_space<vmem>>, vector<32x128xf32>
    tpu.vector_store %arg6[%c0_78, %c0_79], %95 {strides = array<i32>} : memref<32x128xf32, #tpu.memory_space<vmem>>, vector<32x128xf32>,
    return
  }
}

</mosaic_0001>

<bundles_post_ra>
// kernel: tpu_custom_call.1
= control target key start
LH: loop header
LB: loop body
LE: loop exit
PB: predicated region body
PF: predicated region fallthrough
CT: control target
= control target key end

     0   :  { %11 = vsyncpa [#allocation4], 0  ;;  %s1151_s0 = inlined_call_operand.vmem [shape: f32[2,18,64], index: 0, kind: input, shape index: {}]   ;;  %s1152_s1 = inlined_call_operand.hbm [shape: f32[3,64,128], index: 1, kind: input, shape index: {}]   ;;  %s1153_s2 = inlined_call_operand.hbm [shape: f32[3,128,128], index: 2, kind: input, shape index: {}]   ;;  %s1154_s3 = inlined_call_operand.vmem [shape: f32[64,128], index: 3, kind: input, shape index: {}]   ;;  %s1155_s4 = inlined_call_operand.hbm [shape: f32[128,128], index: 4, kind: input, shape index: {}]   ;;  %s1156_s5 = inlined_call_operand.vmem [shape: f32[4,128], index: 5, kind: input, shape index: {}]   ;;  %s1157_s6 = inlined_call_operand.hbm [shape: f32[32,128], index: 6, kind: output, shape index: {}]  }
   0x1   :  { %12 = vsyncpa [#allocation7], 0 }
   0x2   :  { %13 = vsyncpa [#allocation5], 0  ;;  %s33_s23 = sshll.u32 %s1153_s2, 4  ;;  %s842_s24 = smov [#allocation6]   ;;  %s34_s23 = int_to_ptr.hbm [resolvable:$true] %s33_s23 }
   0x3   :  { %s35_s25 = sshll.u32 %s842_s24, 4  ;;  %s20_s28 = sshll.u32 %s1152_s1, 4  ;;  %s36_s25 = int_to_ptr.vmem [resolvable:$true] %s35_s25  ;;  %s21_s28 = int_to_ptr.hbm [resolvable:$true] %s20_s28 }
   0x4   :  { %s843_s29 = smov 128   ;;  %s844_s30 = smov 8  }
   0x5   :  { %41 = dma.hbm_to_vmem [thread:$0]  %s34_s23, 6144, %s36_s25, [#allocation7], %s843_s29, %s843_s29, %s844_s30  }
   0x6   :  { %s845_s7 = smov [#allocation3]   ;;  %s48_s2 = sshll.u32 %s1155_s4, 4  ;;  %s49_s2 = int_to_ptr.hbm [resolvable:$true] %s48_s2 }
   0x7   :  { %s22_s8 = sshll.u32 %s845_s7, 4  ;;  %s846_s1 = smov [#allocation8]   ;;  %s23_s8 = int_to_ptr.vmem [resolvable:$true] %s22_s8 }
   0x8   :  { %28 = dma.hbm_to_vmem [thread:$0]  %s21_s28, 3072, %s23_s8, [#allocation4], %s843_s29, %s843_s29, %s844_s30  }
   0x9   :  { %s50_s11 = sshll.u32 %s846_s1, 4  ;;  %s51_s11 = int_to_ptr.vmem [resolvable:$true] %s50_s11 }
   0xa   :  { %56 = dma.hbm_to_vmem [thread:$0]  %s49_s2, 2048, %s51_s11, [#allocation7], %s843_s29, %s843_s29, %s844_s30  }
   0xb   :  { %836 = dma.done.wait [#allocation4], 3072  }
   0xc   :  { %837 = vsyncadd [#allocation4], 4294964224 }
   0xd   :  { %838 = dma.done.wait [#allocation7], 8192  }
   0xe   :  { %839 = vsyncadd [#allocation7], 4294959104  ;;  %v207_v0 = vld [vmem:[#allocation3 + $0xb8] sm:$0xff]  ;;  %v206_v1 = vld [vmem:[#allocation3 + $0xb0] sm:$0xff]  ;;  %vm112_vm0 = vcmask 523264   ;;  %s848_s10 = smov [#allocation9]  }
   0xf   :  { %v111_v2 = vld [vmem:[#allocation3 + $0x78] sm:$0xff]  ;;  %228 = vmatpush.msra.mxu2 %v207_v0  ;;  %v110_v4 = vld [vmem:[#allocation3 + $0x70] sm:$0xff]  ;;  %v205_v5 = vld [vmem:[#allocation3 + $0xa8] sm:$0xff] }
  0x10   :  { %133 = vmatpush.msra.mxu0 %v111_v2  ;;  %v98_v3 = vld [vmem:[#allocation3 + $0x38] sm:$0xff]  ;;  %v97_v6 = vld [vmem:[#allocation3 + $0x30] sm:$0xff]  ;;  %v109_v7 = vld [vmem:[#allocation3 + $0x68] sm:$0xff] }
  0x11   :  { %174 = vmatpush.msra.mxu1 %v98_v3  ;;  %229 = vmatpush.msra.mxu2 %v206_v1  ;;  %v96_v8 = vld [vmem:[#allocation3 + $0x28] sm:$0xff]  ;;  %v204_v9 = vld [vmem:[#allocation3 + $0xa0] sm:$0xff]  ;;  %v203_v12 = vld [vmem:[#allocation3 + $0x98] sm:$0xff] }
  0x12   :  { %134 = vmatpush.msra.mxu0 %v110_v4  ;;  %v108_v10 = vld [vmem:[#allocation3 + $0x60] sm:$0xff]  ;;  %v107_v13 = vld [vmem:[#allocation3 + $0x58] sm:$0xff]  ;;  %v202_v15 = vld [vmem:[#allocation3 + $0x90] sm:$0xff] }
  0x13   :  { %175 = vmatpush.msra.mxu1 %v97_v6  ;;  %230 = vmatpush.msra.mxu2 %v205_v5  ;;  %v95_v11 = vld [vmem:[#allocation3 + $0x20] sm:$0xff]  ;;  %v94_v14 = vld [vmem:[#allocation3 + $0x18] sm:$0xff]  ;;  %v106_v16 = vld [vmem:[#allocation3 + $0x50] sm:$0xff] }
  0x14   :  { %135 = vmatpush.msra.mxu0 %v109_v7  ;;  %v93_v17 = vld [vmem:[#allocation3 + $0x10] sm:$0xff]  ;;  %v201_v18 = vld [vmem:[#allocation3 + $0x88] sm:$0xff]  ;;  %v200_v21 = vld [vmem:[#allocation3 + $0x80] sm:$0xff] }
  0x15   :  { %176 = vmatpush.msra.mxu1 %v96_v8  ;;  %231 = vmatpush.msra.mxu2 %v204_v9  ;;  %v105_v19 = vld [vmem:[#allocation3 + $0x48] sm:$0xff]  ;;  %v104_v22 = vld [vmem:[#allocation3 + $0x40] sm:$0xff]  ;;  %v902_v23 = vld [vmem:[#allocation8 + $0x78] sm:$0xff] }
  0x16   :  { %136 = vmatpush.msra.mxu0 %v108_v10  ;;  %v92_v20 = vld [vmem:[#allocation3 + $0x8] sm:$0xff]  ;;  %v195_v24 = vld [vmem:[%s1151_s0 + $0x2] sm:$0xff]  ;;  %v91_v25 = vld [vmem:[#allocation3] sm:$0xff]  ;;  %253 = vmatpush.msra.mxu3 %v902_v23 }
  0x17   :  { %177 = vmatpush.msra.mxu1 %v95_v11  ;;  %232 = vmatpush.msra.mxu2 %v203_v12  ;;  %v910_v26 = vld [vmem:[%s1151_s0 + $0x1] sm:$0xff]  ;;  %v922_v29 = vld [vmem:[#allocation8 + $0x68] sm:$0xff]  ;;  %v926_v30 = vld [vmem:[#allocation8 + $0x60] sm:$0xff] }
  0x18   :  { %137 = vmatpush.msra.mxu0 %v107_v13  ;;  %v87_v27 = vld [vmem:[%s1151_s0] sm:$0xff]  ;;  %v196_v31 = vld [vmem:[%s1151_s0 + $0xa] sm:$0xff]  ;;  %v952_v36 = vld [vmem:[#allocation8 + $0x48] sm:$0xff] }
  0x19   :  { %178 = vmatpush.msra.mxu1 %v94_v14  ;;  %233 = vmatpush.msra.mxu2 %v202_v15  ;;  %v916_v28 = vld [vmem:[#allocation8 + $0x70] sm:$0xff]  ;;  %v933_v32 = vld [vmem:[#allocation8 + $0x58] sm:$0xff]  ;;  %v956_v37 = vld [vmem:[#allocation8 + $0x40] sm:$0xff] }
  0x1a   :  { %138 = vmatpush.msra.mxu0 %v106_v16  ;;  %254 = vmatpush.msra.mxu3 %v916_v28  ;;  %v938_v33 = vld [vmem:[%s1151_s0 + $0x9] sm:$0xff]  ;;  %v945_v35 = vld [vmem:[#allocation8 + $0x50] sm:$0xff]  ;;  %v89_v41 = vld [vmem:[%s1151_s0 + $0x18] sm:$0xff] }
  0x1b   :  { %179 = vmatpush.msra.mxu1 %v93_v17  ;;  %234 = vmatpush.msra.mxu2 %v201_v18  ;;  %v88_v34 = vld [vmem:[%s1151_s0 + $0x8] sm:$0xff]  ;;  %v197_v38 = vld [vmem:[%s1151_s0 + $0x1a] sm:$0xff]  ;;  %v986_v44 = vld [vmem:[#allocation8 + $0x20] sm:$0xff] }
  0x1c   :  { %139 = vmatpush.msra.mxu0 %v105_v19  ;;  %255 = vmatpush.msra.mxu3 %v922_v29  ;;  %v963_v39 = vld [vmem:[#allocation8 + $0x38] sm:$0xff]  ;;  %v968_v40 = vld [vmem:[%s1151_s0 + $0x19] sm:$0xff]  ;;  %v1022_v51 = vld [vmem:[#allocation8] sm:$0xff] }
  0x1d   :  { %180 = vmatpush.msra.mxu1 %v92_v20  ;;  %235 = vmatpush.msra.mxu2 %v200_v21  ;;  %v975_v42 = vld [vmem:[#allocation8 + $0x30] sm:$0xff]  ;;  %v982_v43 = vld [vmem:[#allocation8 + $0x28] sm:$0xff]  ;;  %v993_v46 = vld [vmem:[#allocation8 + $0x18] sm:$0xff] }
  0x1e   :  { %140 = vmatpush.msra.mxu0 %v104_v22  ;;  %719 = vmatmul.msk.f32.vlgmr.msra.gmra.mxu2 %vm112_vm0, %v195_v24  ;;  %v198_v45 = vld [vmem:[%s1151_s0 + $0x22] sm:$0xff]  ;;  %v1018_v50 = vld [vmem:[#allocation8 + $0x8] sm:$0xff]  ;;  %v373_v22 = vld [vmem:[%s1154_s3 + $0x30] sm:$0xff] }
  0x1f   :  { %181 = vmatpush.msra.mxu1 %v91_v25  ;;  %711 = vmatmul.msk.f32.vlgmr.msra.gmra.mxu0 %vm112_vm0, %v910_v26  ;;  %v998_v47 = vld [vmem:[%s1151_s0 + $0x21] sm:$0xff]  ;;  %v374_v21 = vld [vmem:[%s1154_s3 + $0x38] sm:$0xff] }
  0x20   :  { %715 = vmatmul.msk.f32.vlgmr.msra.gmra.mxu1 %vm112_vm0, %v87_v27  ;;  %300 = vmatpush.msrb.mxu0 %v902_v23  ;;  %v90_v48 = vld [vmem:[%s1151_s0 + $0x20] sm:$0xff]  ;;  %v372_v25 = vld [vmem:[%s1154_s3 + $0x28] sm:$0xff]  ;;  %s697_s0 = sshll.u32 %s1157_s6, 4  ;;  %s698_s0 = int_to_ptr.hbm [resolvable:$true] %s697_s0 }
  0x21   :  { %256 = vmatpush.msra.mxu3 %v926_v30  ;;  %v1014_v49 = vld [vmem:[#allocation8 + $0x10] sm:$0xff]  ;;  %383 = vmatpush.msrb.mxu1 %v374_v21  ;;  %v429_v21 = vld [vmem:[#allocation6 + $0x48] sm:$0xff] }
  0x22   :  { %301 = vmatpush.msrb.mxu0 %v916_v28 }
  0x23   :  { %257 = vmatpush.msra.mxu3 %v933_v32  ;;  %384 = vmatpush.msrb.mxu1 %v373_v22 }
  0x24   :  { %302 = vmatpush.msrb.mxu0 %v922_v29 }
  0x25   :  { %258 = vmatpush.msra.mxu3 %v945_v35  ;;  %385 = vmatpush.msrb.mxu1 %v372_v25  ;;  %v446_v25 = vld [vmem:[#allocation6 + $0xa8] sm:$0xff] }
  0x26   :  { %720 = vmatmul.msk.f32.gmra.mxu2 %vm112_vm0, %v196_v31  ;;  %303 = vmatpush.msrb.mxu0 %v926_v30  ;;  %v371_v31 = vld [vmem:[%s1154_s3 + $0x20] sm:$0xff] }
  0x27   :  { %712 = vmatmul.msk.f32.gmra.mxu0 %vm112_vm0, %v938_v33  ;;  %259 = vmatpush.msra.mxu3 %v952_v36 }
  0x28   :  { %716 = vmatmul.msk.f32.gmra.mxu1 %vm112_vm0, %v88_v34  ;;  %304 = vmatpush.msrb.mxu0 %v933_v32 }
  0x29   :  { %260 = vmatpush.msra.mxu3 %v956_v37  ;;  %386 = vmatpush.msrb.mxu1 %v371_v31 }
  0x2a   :  { %305 = vmatpush.msrb.mxu0 %v945_v35 }
  0x2b   :  { %261 = vmatpush.msra.mxu3 %v963_v39 }
  0x2c   :  { %306 = vmatpush.msrb.mxu0 %v952_v36 }
  0x2d   :  { %262 = vmatpush.msra.mxu3 %v975_v42 }
  0x2e   :  { %721 = vmatmul.msk.f32.gmra.mxu2 %vm112_vm0, %v197_v38  ;;  %307 = vmatpush.msrb.mxu0 %v956_v37  ;;  %v370_v38 = vld [vmem:[%s1154_s3 + $0x18] sm:$0xff] }
  0x2f   :  { %713 = vmatmul.msk.f32.gmra.mxu0 %vm112_vm0, %v968_v40  ;;  %263 = vmatpush.msra.mxu3 %v982_v43 }
  0x30   :  { %717 = vmatmul.msk.f32.gmra.mxu1 %vm112_vm0, %v89_v41  ;;  %308 = vmatpush.msrb.mxu0 %v963_v39  ;;  %v369_v41 = vld [vmem:[%s1154_s3 + $0x10] sm:$0xff] }
  0x31   :  { %264 = vmatpush.msra.mxu3 %v986_v44  ;;  %387 = vmatpush.msrb.mxu1 %v370_v38  ;;  %v528_v38 = vld [vmem:[#allocation6 + $0x140] sm:$0xff] }
  0x32   :  { %309 = vmatpush.msrb.mxu0 %v975_v42 }
  0x33   :  { %265 = vmatpush.msra.mxu3 %v993_v46  ;;  %388 = vmatpush.msrb.mxu1 %v369_v41  ;;  %v445_v41 = vld [vmem:[#allocation6 + $0xa0] sm:$0xff] }
  0x34   :  { %310 = vmatpush.msrb.mxu0 %v982_v43 }
  0x35   :  { %266 = vmatpush.msra.mxu3 %v1014_v49 }
  0x36   :  { %722 = vmatmul.msk.f32.gmra.mxu2 %vm112_vm0, %v198_v45  ;;  %311 = vmatpush.msrb.mxu0 %v986_v44 }
  0x37   :  { %714 = vmatmul.msk.f32.gmra.mxu0 %vm112_vm0, %v998_v47  ;;  %267 = vmatpush.msra.mxu3 %v1018_v50 }
  0x38   :  { %718 = vmatmul.msk.f32.gmra.mxu1 %vm112_vm0, %v90_v48  ;;  %312 = vmatpush.msrb.mxu0 %v993_v46  ;;  %v368_v48 = vld [vmem:[%s1154_s3 + $0x8] sm:$0xff] }
  0x39   :  { %268 = vmatpush.msra.mxu3 %v1022_v51  ;;  %389 = vmatpush.msrb.mxu1 %v368_v48 }
  0x3a   :  { %313 = vmatpush.msrb.mxu0 %v1014_v49 }
  0x3c   :  { %314 = vmatpush.msrb.mxu0 %v1018_v50 }
  0x3e   :  { %315 = vmatpush.msrb.mxu0 %v1022_v51 }
  0x9c   :  { %v142_v52 = vpop.f32.mrf.mxu0 }
  0x9d   :  { %v183_v53 = vpop.f32.mrf.mxu1 }
  0x9e   :  { %v184_v54 = vadd.f32 %v183_v53, %v142_v52  ;;  %v367_v52 = vld [vmem:[%s1154_s3] sm:$0xff] }
  0x9f   :  { %390 = vmatpush.msrb.mxu1 %v367_v52  ;;  %v427_v52 = vld [vmem:[#allocation6 + $0x38] sm:$0xff] }
  0xa0   :  { %723 = vmatmul.msk.f32.vlgmr.msrb.gmra.mxu1 %vm112_vm0, %v910_v26 }
  0xa1   :  { %v237_v55 = vpop.f32.mrf.mxu2  ;;  %569 = vmatpush.msra.mxu1 %v902_v23 }
  0xa2   :  { %v249_v56 = vadd.f32 %v237_v55, %v184_v54 }
  0xa3   :  { %570 = vmatpush.msra.mxu1 %v916_v28 }
  0xa4   :  { %269 = vmatmul.f32.vlgmr.msra.gmra.mxu3 %v249_v56  ;;  %v145_v57 = vpop.f32.mrf.mxu0 }
  0xa5   :  { %v186_v58 = vpop.f32.mrf.mxu1  ;;  %571 = vmatpush.msra.mxu1 %v922_v29 }
  0xa6   :  { %v187_v59 = vadd.f32 %v186_v58, %v145_v57  ;;  %v456_v57 = vld [vmem:[#allocation6 + $0xf8] sm:$0xff]  ;;  %v455_v58 = vld [vmem:[#allocation6 + $0xf0] sm:$0xff] }
  0xa7   :  { %572 = vmatpush.msra.mxu1 %v926_v30  ;;  %457 = vmatpush.msrb.mxu2 %v456_v57  ;;  %v443_v57 = vld [vmem:[#allocation6 + $0x90] sm:$0xff] }
  0xa8   :  { %724 = vmatmul.msk.f32.gmra.mxu1 %vm112_vm0, %v938_v33 }
  0xa9   :  { %v240_v60 = vpop.f32.mrf.mxu2  ;;  %573 = vmatpush.msra.mxu1 %v933_v32  ;;  %458 = vmatpush.msrb.mxu2 %v455_v58 }
  0xaa   :  { %v250_v61 = vadd.f32 %v240_v60, %v187_v59  ;;  %v454_v59 = vld [vmem:[#allocation6 + $0xe8] sm:$0xff] }
  0xab   :  { %574 = vmatpush.msra.mxu1 %v945_v35  ;;  %459 = vmatpush.msrb.mxu2 %v454_v59 }
  0xac   :  { %272 = vmatmul.f32.gmra.mxu3 %v250_v61  ;;  %v148_v62 = vpop.f32.mrf.mxu0 }
  0xad   :  { %v189_v63 = vpop.f32.mrf.mxu1  ;;  %575 = vmatpush.msra.mxu1 %v952_v36 }
  0xae   :  { %v190_v0 = vadd.f32 %v189_v63, %v148_v62  ;;  %v435_v62 = vld [vmem:[#allocation6 + $0x78] sm:$0xff] }
  0xaf   :  { %576 = vmatpush.msra.mxu1 %v956_v37  ;;  %486 = vmatpush.msrb.mxu3 %v435_v62  ;;  %v452_v63 = vld [vmem:[#allocation6 + $0xd8] sm:$0xff]  ;;  %v442_v62 = vld [vmem:[#allocation6 + $0x88] sm:$0xff] }
  0xb0   :  { %725 = vmatmul.msk.f32.gmra.mxu1 %vm112_vm0, %v968_v40 }
  0xb1   :  { %v243_v1 = vpop.f32.mrf.mxu2  ;;  %577 = vmatpush.msra.mxu1 %v963_v39 }
  0xb2   :  { %v251_v2 = vadd.f32 %v243_v1, %v190_v0  ;;  %v434_v0 = vld [vmem:[#allocation6 + $0x70] sm:$0xff] }
  0xb3   :  { %578 = vmatpush.msra.mxu1 %v975_v42  ;;  %v534_v1 = vld [vmem:[#allocation6 + $0x170] sm:$0xff]  ;;  %487 = vmatpush.msrb.mxu3 %v434_v0  ;;  %v524_v0 = vld [vmem:[#allocation6 + $0x120] sm:$0xff] }
  0xb4   :  { %275 = vmatmul.f32.gmra.mxu3 %v251_v2  ;;  %v151_v3 = vpop.f32.mrf.mxu0 }
  0xb5   :  { %v192_v4 = vpop.f32.mrf.mxu1  ;;  %579 = vmatpush.msra.mxu1 %v982_v43 }
  0xb6   :  { %v193_v5 = vadd.f32 %v192_v4, %v151_v3  ;;  %v433_v4 = vld [vmem:[#allocation6 + $0x68] sm:$0xff] }
  0xb7   :  { %580 = vmatpush.msra.mxu1 %v986_v44  ;;  %488 = vmatpush.msrb.mxu3 %v433_v4  ;;  %v422_v4 = vld [vmem:[#allocation6 + $0x10] sm:$0xff] }
  0xb8   :  { %726 = vmatmul.msk.f32.gmra.mxu1 %vm112_vm0, %v998_v47  ;;  %v535_v47 = vld [vmem:[#allocation6 + $0x178] sm:$0xff] }
  0xb9   :  { %v246_v6 = vpop.f32.mrf.mxu2  ;;  %581 = vmatpush.msra.mxu1 %v993_v46  ;;  %536 = vmatpush.msra.mxu0 %v535_v47 }
  0xba   :  { %v252_v7 = vadd.f32 %v246_v6, %v193_v5  ;;  %v533_v5 = vld [vmem:[#allocation6 + $0x168] sm:$0xff] }
  0xbb   :  { %582 = vmatpush.msra.mxu1 %v1014_v49  ;;  %537 = vmatpush.msra.mxu0 %v534_v1  ;;  %v450_v6 = vld [vmem:[#allocation6 + $0xc8] sm:$0xff]  ;;  %v441_v1 = vld [vmem:[#allocation6 + $0x80] sm:$0xff] }
  0xbc   :  { %278 = vmatmul.f32.gmra.mxu3 %v252_v7 }
  0xbd   :  { %583 = vmatpush.msra.mxu1 %v1018_v50  ;;  %538 = vmatpush.msra.mxu0 %v533_v5  ;;  %v847_v5 = vmov 0.0  }
  0xbe   :  { %408 = vst [vmem:[#allocation2] sm:$0x1] %v847_v5 }
  0xbf   :  { %584 = vmatpush.msra.mxu1 %v1022_v51  ;;  %409 = vst [vmem:[#allocation2 + $0x18] sm:$0x1] %v847_v5 }
  0xc0   :  { %410 = vst [vmem:[#allocation2 + $0x11] sm:$0x1] %v847_v5 }
  0xc1   :  { %411 = vst [vmem:[#allocation2 + $0x29] sm:$0x1] %v847_v5 }
 0x11d   :  { %v1090_v59 = vpop.f32.mrf.mxu1 }
 0x127   :  { %v270_v8 = vpop.f32.mrf.mxu3 }
 0x12f   :  { %v273_v9 = vpop.f32.mrf.mxu3 }
 0x130   :  { %v282_v11 = vadd.f32 %v273_v9, %v270_v8  ;;  %v432_v9 = vld [vmem:[#allocation6 + $0x60] sm:$0xff] }
 0x131   :  { %489 = vmatpush.msrb.mxu3 %v432_v9  ;;  %v420_v9 = vld [vmem:[#allocation6] sm:$0xff] }
 0x137   :  { %v276_v10 = vpop.f32.mrf.mxu3 }
 0x138   :  { %v283_v12 = vadd.f32 %v282_v11, %v276_v10  ;;  %v532_v10 = vld [vmem:[#allocation6 + $0x160] sm:$0xff] }
 0x139   :  { %539 = vmatpush.msra.mxu0 %v532_v10  ;;  %v520_v10 = vld [vmem:[#allocation6 + $0x100] sm:$0xff] }
 0x13f   :  { %v279_v13 = vpop.f32.mrf.mxu3 }
 0x140   :  { %v284_v14 = vadd.f32 %v283_v12, %v279_v13  ;;  %v449_v12 = vld [vmem:[#allocation6 + $0xc0] sm:$0xff]  ;;  %v431_v13 = vld [vmem:[#allocation6 + $0x58] sm:$0xff] }
 0x141   :  { %490 = vmatpush.msrb.mxu3 %v431_v13 }
 0x142   :  { %v285_v15 = vrot.slane %v284_v14, 4 }
 0x144   :  { %v286_v16 = vadd.f32 %v285_v15, %v284_v14  ;;  %v531_v14 = vld [vmem:[#allocation6 + $0x158] sm:$0xff] }
 0x145   :  { %540 = vmatpush.msra.mxu0 %v531_v14 }
 0x146   :  { %v287_v17 = vrot.slane %v286_v16, 2 }
 0x148   :  { %v288_v18 = vadd.f32 %v287_v17, %v286_v16  ;;  %v448_v16 = vld [vmem:[#allocation6 + $0xb8] sm:$0xff]  ;;  %v430_v17 = vld [vmem:[#allocation6 + $0x50] sm:$0xff] }
 0x149   :  { %491 = vmatpush.msrb.mxu3 %v430_v17 }
 0x14a   :  { %v289_v19 = vrot.slane %v288_v18, 1 }
 0x14b   :  { %492 = vmatpush.msrb.mxu3 %v429_v21 }
 0x14c   :  { %v290_v20 = vadd.f32 %v289_v19, %v288_v18  ;;  %v530_v18 = vld [vmem:[#allocation6 + $0x150] sm:$0xff] }
 0x14d   :  { %541 = vmatpush.msra.mxu0 %v530_v18 }
 0x14e   :  { %v291_v24 = vmul.f32 0.001953125, %v290_v20  ;;  %v447_v20 = vld [vmem:[#allocation6 + $0xb0] sm:$0xff] }
 0x150   :  { %v1035_v27 = vsub.f32 %v249_v56, %v291_v24  ;;  %v1048_v45 = vsub.f32 %v250_v61, %v291_v24  ;;  %v1061_v54 = vsub.f32 %v251_v2, %v291_v24  ;;  %v1071_v26 = vsub.f32 %v252_v7, %v291_v24  ;;  %v453_v61 = vld [vmem:[#allocation6 + $0xe0] sm:$0xff]  ;;  %v451_v2 = vld [vmem:[#allocation6 + $0xd0] sm:$0xff]  ;;  %v529_v24 = vld [vmem:[#allocation6 + $0x148] sm:$0xff] }
 0x151   :  { %460 = vmatpush.msrb.mxu2 %v453_v61  ;;  %542 = vmatpush.msra.mxu0 %v529_v24  ;;  %v525_v61 = vld [vmem:[#allocation6 + $0x128] sm:$0xff] }
 0x152   :  { %v296_v34 = vmul.f32 %v1035_v27, %v1035_v27  ;;  %v297_v53 = vmul.f32 %v1048_v45, %v1048_v45  ;;  %v298_v55 = vmul.f32 %v1061_v54, %v1061_v54  ;;  %v299_v56 = vmul.f32 %v1071_v26, %v1071_v26 }
 0x153   :  { %461 = vmatpush.msrb.mxu2 %v452_v63  ;;  %543 = vmatpush.msra.mxu0 %v528_v38  ;;  %v424_v63 = vld [vmem:[#allocation6 + $0x20] sm:$0xff] }
 0x154   :  { %316 = vmatmul.f32.vlgmr.msrb.gmra.mxu0 %v296_v34  ;;  %v428_v34 = vld [vmem:[#allocation6 + $0x40] sm:$0xff] }
 0x155   :  { %462 = vmatpush.msrb.mxu2 %v451_v2  ;;  %493 = vmatpush.msrb.mxu3 %v428_v34  ;;  %v423_v2 = vld [vmem:[#allocation6 + $0x18] sm:$0xff] }
 0x157   :  { %463 = vmatpush.msrb.mxu2 %v450_v6  ;;  %494 = vmatpush.msrb.mxu3 %v427_v52  ;;  %v522_v6 = vld [vmem:[#allocation6 + $0x110] sm:$0xff] }
 0x159   :  { %464 = vmatpush.msrb.mxu2 %v449_v12  ;;  %v395_v12 = vpop.f32.mrf.mxu1 }
 0x15b   :  { %465 = vmatpush.msrb.mxu2 %v448_v16  ;;  %v339_v16 = vld [vmem:[%s1156_s5] sm:$0x1] }
 0x15c   :  { %319 = vmatmul.f32.gmra.mxu0 %v297_v53  ;;  %v527_v53 = vld [vmem:[#allocation6 + $0x138] sm:$0xff] }
 0x15d   :  { %466 = vmatpush.msrb.mxu2 %v447_v20  ;;  %544 = vmatpush.msra.mxu0 %v527_v53 }
 0x15f   :  { %467 = vmatpush.msrb.mxu2 %v446_v25 }
 0x161   :  { %468 = vmatpush.msrb.mxu2 %v445_v41 }
 0x164   :  { %322 = vmatmul.f32.gmra.mxu0 %v298_v55  ;;  %v444_v55 = vld [vmem:[#allocation6 + $0x98] sm:$0xff] }
 0x165   :  { %469 = vmatpush.msrb.mxu2 %v444_v55 }
 0x167   :  { %470 = vmatpush.msrb.mxu2 %v443_v57 }
 0x169   :  { %471 = vmatpush.msrb.mxu2 %v442_v62 }
 0x16b   :  { %472 = vmatpush.msrb.mxu2 %v441_v1 }
 0x16c   :  { %325 = vmatmul.f32.gmra.mxu0 %v299_v56 }
 0x16d   :  { %616 = vmatpush.msra.mxu2 %v902_v23 }
 0x16f   :  { %617 = vmatpush.msra.mxu2 %v916_v28 }
 0x171   :  { %618 = vmatpush.msra.mxu2 %v922_v29  ;;  %v398_v29 = vpop.f32.mrf.mxu1 }
 0x173   :  { %619 = vmatpush.msra.mxu2 %v926_v30 }
 0x175   :  { %620 = vmatpush.msra.mxu2 %v933_v32 }
 0x177   :  { %621 = vmatpush.msra.mxu2 %v945_v35  ;;  %v734_v35 = vld [vmem:[%s1156_s5 + $0x1] ss:$0 sm:$0xff] }
 0x179   :  { %622 = vmatpush.msra.mxu2 %v952_v36  ;;  %v401_v34 = vpop.f32.mrf.mxu1 }
 0x17b   :  { %623 = vmatpush.msra.mxu2 %v956_v37 }
 0x17d   :  { %624 = vmatpush.msra.mxu2 %v963_v39 }
 0x17f   :  { %625 = vmatpush.msra.mxu2 %v975_v42 }
 0x181   :  { %626 = vmatpush.msra.mxu2 %v982_v43 }
 0x183   :  { %627 = vmatpush.msra.mxu2 %v986_v44 }
 0x185   :  { %628 = vmatpush.msra.mxu2 %v993_v46 }
 0x187   :  { %629 = vmatpush.msra.mxu2 %v1014_v49 }
 0x189   :  { %630 = vmatpush.msra.mxu2 %v1018_v50 }
 0x18b   :  { %631 = vmatpush.msra.mxu2 %v1022_v51 }
 0x1d1   :  { %v317_v33 = vpop.f32.mrf.mxu0 }
 0x1d9   :  { %v320_v40 = vpop.f32.mrf.mxu0 }
 0x1da   :  { %v329_v3 = vadd.f32 %v320_v40, %v317_v33  ;;  %v426_v33 = vld [vmem:[#allocation6 + $0x30] sm:$0xff] }
 0x1db   :  { %v526_v40 = vld [vmem:[#allocation6 + $0x130] sm:$0xff]  ;;  %495 = vmatpush.msrb.mxu3 %v426_v33 }
 0x1dc   :  { %545 = vmatpush.msra.mxu0 %v526_v40 }
 0x1de   :  { %546 = vmatpush.msra.mxu0 %v525_v61 }
 0x1e0   :  { %547 = vmatpush.msra.mxu0 %v524_v0 }
 0x1e1   :  { %v323_v60 = vpop.f32.mrf.mxu0 }
 0x1e2   :  { %v330_v7 = vadd.f32 %v329_v3, %v323_v60  ;;  %v425_v60 = vld [vmem:[#allocation6 + $0x28] sm:$0xff]  ;;  %v523_v3 = vld [vmem:[#allocation6 + $0x118] sm:$0xff] }
 0x1e3   :  { %496 = vmatpush.msrb.mxu3 %v425_v60  ;;  %548 = vmatpush.msra.mxu0 %v523_v3 }
 0x1e5   :  { %497 = vmatpush.msrb.mxu3 %v424_v63  ;;  %549 = vmatpush.msra.mxu0 %v522_v6 }
 0x1e7   :  { %498 = vmatpush.msrb.mxu3 %v423_v2 }
 0x1e9   :  { %v326_v8 = vpop.f32.mrf.mxu0  ;;  %499 = vmatpush.msrb.mxu3 %v422_v4 }
 0x1ea   :  { %v331_v11 = vadd.f32 %v330_v7, %v326_v8  ;;  %v421_v7 = vld [vmem:[#allocation6 + $0x8] sm:$0xff] }
 0x1eb   :  { %v521_v8 = vld [vmem:[#allocation6 + $0x108] sm:$0xff]  ;;  %500 = vmatpush.msrb.mxu3 %v421_v7 }
 0x1ec   :  { %v332_v15 = vrot.slane %v331_v11, 4  ;;  %550 = vmatpush.msra.mxu0 %v521_v8 }
 0x1ed   :  { %501 = vmatpush.msrb.mxu3 %v420_v9 }
 0x1ee   :  { %v333_v19 = vadd.f32 %v332_v15, %v331_v11  ;;  %551 = vmatpush.msra.mxu0 %v520_v10 }
 0x1f0   :  { %v334_v22 = vrot.slane %v333_v19, 2 }
 0x1f2   :  { %v335_v31 = vadd.f32 %v334_v22, %v333_v19 }
 0x1f4   :  { %v336_v48 = vrot.slane %v335_v31, 1 }
 0x1f6   :  { %v337_v56 = vadd.f32 %v336_v48, %v335_v31 }
 0x1f8   :  { %v338_v58 = vmul.f32 0.001953125, %v337_v56 }
 0x1fa   :  { %v340_v47 = vadd.f32 1e-05, %v338_v58 }
 0x1fc   :  { %736 = vrsqrt.f32 %v340_v47  ;;  %vm347_vm2 = vweird.f32 %v340_v47 }
 0x202   :  { %v737_v11 = vpop.eup %736 }
 0x203   :  { %v342_v13 = vmul.f32 %v737_v11, %v340_v47  ;;  %vm348_vm1 = vweird.f32 %v737_v11 }
 0x204   :  { %vm349_vm3 = vmor %vm347_vm2, %vm348_vm1 }
 0x205   :  { %v343_v14 = vmul.f32 %v737_v11, %v342_v13 }
 0x207   :  { %v344_v23 = vmul.f32 0.5, %v343_v14 }
 0x209   :  { %v345_v15 = vsub.f32 1.5, %v344_v23 }
 0x20b   :  { %v346_v28 = vmul.f32 %v737_v11, %v345_v15 }
 0x20d   :  { %v350_v17 = vsel %vm349_vm3, %v737_v11, %v346_v28 }
 0x20e   :  { %v351_v30 = vmul.f32 %v350_v17, %v339_v16 }
 0x210   :  { %v352_v32 = vperm.slane %v351_v30, 0 }
 0x212   :  { %v353_v18 = vmul.f32 %v352_v32, %v1035_v27  ;;  %v354_v19 = vmul.f32 %v352_v32, %v1048_v45  ;;  %v355_v36 = vmul.f32 %v352_v32, %v1061_v54  ;;  %v356_v20 = vmul.f32 %v352_v32, %v1071_v26 }
 0x214   :  { %v359_v37 = vadd.f32 %v734_v35, %v353_v18  ;;  %v360_v21 = vadd.f32 %v734_v35, %v354_v19  ;;  %v361_v39 = vadd.f32 %v734_v35, %v355_v36  ;;  %v362_v22 = vadd.f32 %v734_v35, %v356_v20 }
 0x216   :  { %v363_v24 = vmax.f32 %v359_v37, 0.0  ;;  %v364_v25 = vmax.f32 %v360_v21, 0.0  ;;  %v365_v31 = vmax.f32 %v361_v39, 0.0  ;;  %v366_v42 = vmax.f32 %v362_v22, 0.0 }
 0x218   :  { %v1116_v27 = vadd.f32 %v1090_v59, %v363_v24  ;;  %v1118_v45 = vadd.f32 %v395_v12, %v364_v25  ;;  %v1120_v54 = vadd.f32 %v398_v29, %v365_v31  ;;  %v1122_v43 = vadd.f32 %v401_v34, %v366_v42 }
 0x21a   :  { %412 = vst [vmem:[#allocation2 + $0x1] sm:$0xff] %v1116_v27  ;;  %473 = vmatmul.f32.vlgmr.msrb.gmra.mxu2 %v1116_v27 }
 0x21b   :  { %413 = vst [vmem:[#allocation2 + $0x9] sm:$0xff] %v1118_v45 }
 0x21c   :  { %414 = vst [vmem:[#allocation2 + $0x19] sm:$0xff] %v1120_v54 }
 0x21d   :  { %415 = vst [vmem:[#allocation2 + $0x21] sm:$0xff] %v1122_v43 }
 0x221   :  { %v416_v44 = vld [vmem:[#allocation2] sm:$0xff] }
 0x222   :  { %502 = vmatmul.f32.vlgmr.msrb.gmra.mxu3 %v416_v44  ;;  %v515_v46 = vld [vmem:[#allocation2 + $0x2] sm:$0xff]  ;;  %476 = vmatmul.f32.gmra.mxu2 %v1118_v45  ;;  %v516_v26 = vld [vmem:[#allocation2 + $0xa] sm:$0xff] }
 0x223   :  { %552 = vmatmul.f32.vlgmr.msra.gmra.mxu0 %v515_v46  ;;  %v417_v49 = vld [vmem:[#allocation2 + $0x8] sm:$0xff]  ;;  %v418_v38 = vld [vmem:[#allocation2 + $0x18] sm:$0xff] }
 0x224   :  { %v517_v50 = vld [vmem:[#allocation2 + $0x1a] sm:$0xff]  ;;  %v518_v51 = vld [vmem:[#allocation2 + $0x22] sm:$0xff] }
 0x225   :  { %v419_v41 = vld [vmem:[#allocation2 + $0x20] sm:$0xff] }
 0x22a   :  { %505 = vmatmul.f32.gmra.mxu3 %v417_v49  ;;  %479 = vmatmul.f32.gmra.mxu2 %v1120_v54 }
 0x22b   :  { %555 = vmatmul.f32.gmra.mxu0 %v516_v26 }
 0x232   :  { %508 = vmatmul.f32.gmra.mxu3 %v418_v38  ;;  %482 = vmatmul.f32.gmra.mxu2 %v1122_v43 }
 0x233   :  { %558 = vmatmul.f32.gmra.mxu0 %v517_v50 }
 0x23a   :  { %511 = vmatmul.f32.gmra.mxu3 %v419_v41 }
 0x23b   :  { %561 = vmatmul.f32.gmra.mxu0 %v518_v51 }
 0x29d   :  { %v474_v48 = vpop.f32.mrf.mxu2 }
 0x2a0   :  { %v553_v52 = vpop.f32.mrf.mxu0 }
 0x2a5   :  { %v503_v53 = vpop.f32.mrf.mxu3  ;;  %v477_v33 = vpop.f32.mrf.mxu2 }
 0x2a6   :  { %v504_v55 = vadd.f32 %v503_v53, %v474_v48  ;;  %v655_v53 = vld [vmem:[%s1156_s5 + $0x2] sm:$0x1] }
 0x2a8   :  { %v565_v56 = vadd.f32 %v553_v52, %v504_v55  ;;  %v556_v40 = vpop.f32.mrf.mxu0 }
 0x2aa   :  { %585 = vmatmul.f32.vlgmr.msra.gmra.mxu1 %v565_v56 }
 0x2ad   :  { %v506_v57 = vpop.f32.mrf.mxu3  ;;  %v480_v60 = vpop.f32.mrf.mxu2 }
 0x2ae   :  { %v507_v58 = vadd.f32 %v506_v57, %v477_v33  ;;  %v735_v57 = vld [vmem:[%s1156_s5 + $0x3] ss:$0 sm:$0xff]  ;;  %s695_s5 = sshll.u32 %s848_s10, 4  ;;  %s696_s5 = int_to_ptr.vmem [resolvable:$true] %s695_s5 }
 0x2b0   :  { %v566_v59 = vadd.f32 %v556_v40, %v507_v58  ;;  %v559_v61 = vpop.f32.mrf.mxu0 }
 0x2b2   :  { %588 = vmatmul.f32.gmra.mxu1 %v566_v59 }
 0x2b5   :  { %v509_v62 = vpop.f32.mrf.mxu3  ;;  %v483_v0 = vpop.f32.mrf.mxu2 }
 0x2b6   :  { %v510_v47 = vadd.f32 %v509_v62, %v480_v60 }
 0x2b8   :  { %v567_v63 = vadd.f32 %v559_v61, %v510_v47  ;;  %v562_v3 = vpop.f32.mrf.mxu0 }
 0x2ba   :  { %591 = vmatmul.f32.gmra.mxu1 %v567_v63 }
 0x2bd   :  { %v512_v1 = vpop.f32.mrf.mxu3 }
 0x2be   :  { %v513_v2 = vadd.f32 %v512_v1, %v483_v0 }
 0x2c0   :  { %v568_v4 = vadd.f32 %v562_v3, %v513_v2 }
 0x2c2   :  { %594 = vmatmul.f32.gmra.mxu1 %v568_v4 }
 0x327   :  { %v586_v5 = vpop.f32.mrf.mxu1 }
 0x32f   :  { %v589_v6 = vpop.f32.mrf.mxu1 }
 0x330   :  { %v598_v8 = vadd.f32 %v589_v6, %v586_v5 }
 0x337   :  { %v592_v7 = vpop.f32.mrf.mxu1 }
 0x338   :  { %v599_v9 = vadd.f32 %v598_v8, %v592_v7 }
 0x33f   :  { %v595_v10 = vpop.f32.mrf.mxu1 }
 0x340   :  { %v600_v11 = vadd.f32 %v599_v9, %v595_v10 }
 0x342   :  { %v601_v12 = vrot.slane %v600_v11, 4 }
 0x344   :  { %v602_v13 = vadd.f32 %v601_v12, %v600_v11 }
 0x346   :  { %v603_v14 = vrot.slane %v602_v13, 2 }
 0x348   :  { %v604_v23 = vadd.f32 %v603_v14, %v602_v13 }
 0x34a   :  { %v605_v15 = vrot.slane %v604_v23, 1 }
 0x34c   :  { %v606_v28 = vadd.f32 %v605_v15, %v604_v23 }
 0x34e   :  { %v607_v16 = vmul.f32 0.001953125, %v606_v28 }
 0x350   :  { %v608_v29 = vsub.f32 %v565_v56, %v607_v16  ;;  %v609_v30 = vsub.f32 %v566_v59, %v607_v16  ;;  %v610_v35 = vsub.f32 %v567_v63, %v607_v16  ;;  %v611_v19 = vsub.f32 %v568_v4, %v607_v16 }
 0x352   :  { %v612_v17 = vmul.f32 %v608_v29, %v608_v29  ;;  %v613_v32 = vmul.f32 %v609_v30, %v609_v30  ;;  %v614_v18 = vmul.f32 %v610_v35, %v610_v35  ;;  %v615_v36 = vmul.f32 %v611_v19, %v611_v19 }
 0x354   :  { %632 = vmatmul.f32.vlgmr.msra.gmra.mxu2 %v612_v17 }
 0x35c   :  { %635 = vmatmul.f32.gmra.mxu2 %v613_v32 }
 0x364   :  { %638 = vmatmul.f32.gmra.mxu2 %v614_v18 }
 0x36c   :  { %641 = vmatmul.f32.gmra.mxu2 %v615_v36 }
 0x3d7   :  { %v633_v20 = vpop.f32.mrf.mxu2 }
 0x3df   :  { %v636_v37 = vpop.f32.mrf.mxu2 }
 0x3e0   :  { %v645_v39 = vadd.f32 %v636_v37, %v633_v20 }
 0x3e7   :  { %v639_v21 = vpop.f32.mrf.mxu2 }
 0x3e8   :  { %v646_v22 = vadd.f32 %v645_v39, %v639_v21 }
 0x3ef   :  { %v642_v24 = vpop.f32.mrf.mxu2 }
 0x3f0   :  { %v647_v25 = vadd.f32 %v646_v22, %v642_v24 }
 0x3f2   :  { %v648_v31 = vrot.slane %v647_v25, 4 }
 0x3f4   :  { %v649_v42 = vadd.f32 %v648_v31, %v647_v25 }
 0x3f6   :  { %v650_v34 = vrot.slane %v649_v42, 2 }
 0x3f8   :  { %v651_v44 = vadd.f32 %v650_v34, %v649_v42 }
 0x3fa   :  { %v652_v46 = vrot.slane %v651_v44, 1 }
 0x3fc   :  { %v653_v49 = vadd.f32 %v652_v46, %v651_v44 }
 0x3fe   :  { %v654_v26 = vmul.f32 0.001953125, %v653_v49 }
 0x400   :  { %v656_v38 = vadd.f32 1e-05, %v654_v26 }
 0x402   :  { %738 = vrsqrt.f32 %v656_v38  ;;  %vm663_vm5 = vweird.f32 %v656_v38 }
 0x408   :  { %v739_v50 = vpop.eup %738 }
 0x409   :  { %v658_v41 = vmul.f32 %v739_v50, %v656_v38  ;;  %vm664_vm4 = vweird.f32 %v739_v50 }
 0x40a   :  { %vm665_vm6 = vmor %vm663_vm5, %vm664_vm4 }
 0x40b   :  { %v659_v51 = vmul.f32 %v739_v50, %v658_v41 }
 0x40d   :  { %v660_v48 = vmul.f32 0.5, %v659_v51 }
 0x40f   :  { %v661_v52 = vsub.f32 1.5, %v660_v48 }
 0x411   :  { %v662_v55 = vmul.f32 %v739_v50, %v661_v52 }
 0x413   :  { %v666_v56 = vsel %vm665_vm6, %v739_v50, %v662_v55 }
 0x414   :  { %v667_v33 = vmul.f32 %v666_v56, %v655_v53 }
 0x416   :  { %v668_v40 = vperm.slane %v667_v33, 0 }
 0x418   :  { %v669_v58 = vmul.f32 %v668_v40, %v608_v29  ;;  %v670_v59 = vmul.f32 %v668_v40, %v609_v30  ;;  %v671_v60 = vmul.f32 %v668_v40, %v610_v35  ;;  %v672_v61 = vmul.f32 %v668_v40, %v611_v19 }
 0x41a   :  { %v675_v62 = vadd.f32 %v735_v57, %v669_v58  ;;  %v676_v47 = vadd.f32 %v735_v57, %v670_v59  ;;  %v677_v63 = vadd.f32 %v735_v57, %v671_v60  ;;  %v678_v0 = vadd.f32 %v735_v57, %v672_v61 }
 0x41c   :  { %v679_v1 = vmax.f32 %v675_v62, 0.0  ;;  %v680_v2 = vmax.f32 %v676_v47, 0.0  ;;  %v681_v3 = vmax.f32 %v677_v63, 0.0  ;;  %v682_v4 = vmax.f32 %v678_v0, 0.0 }
 0x41e   :  { %v683_v5 = vadd.f32 %v679_v1, %v1116_v27  ;;  %v684_v6 = vadd.f32 %v680_v2, %v1118_v45  ;;  %v685_v7 = vadd.f32 %v681_v3, %v1120_v54  ;;  %v686_v8 = vadd.f32 %v682_v4, %v1122_v43 }
 0x420   :  { %687 = vst [vmem:[#allocation9] sm:$0xff] %v683_v5 }
 0x421   :  { %688 = vst [vmem:[#allocation9 + $0x8] sm:$0xff] %v684_v6 }
 0x422   :  { %689 = vst [vmem:[#allocation9 + $0x10] sm:$0xff] %v685_v7 }
 0x423   :  { %690 = vst [vmem:[#allocation9 + $0x18] sm:$0xff] %v686_v8 }
 0x424   :  { %703 = dma.vmem_to_hbm [thread:$0]  %s696_s5, 512, %s698_s0, [#allocation5], %s843_s29, %s843_s29, %s844_s30  }
 0x425   :  { %840 = dma.done.wait [#allocation5], 512  }
 0x426   :  { %841 = vsyncadd [#allocation5], 4294966784 }
 0x427   :  { %708 = vsyncpa [#allocation4], 1 }
 0x428   :  { %709 = vsyncpa [#allocation7], 1 }
 0x429   :  { %710 = vsyncpa [#allocation5], 1 }

</bundles_post_ra>
